<compile_context>
chip_gen: v7x
topology: tpu7x:2x2x1
jax: 0.10.0
libtpu: 0.0.40
codegen_flags: <defaults>
</compile_context>

<pallas_src>
import jax
import jax.numpy as jnp
from jax.experimental import pallas as pl
from jax.experimental.pallas import tpu as pltpu

_LANE = 128
# Double-buffered (x + out) bytes allowed per grid step. Conservative across
# generations: under v5e's 16 MiB scoped default, far under v7x's 64 MiB VMEM.
_VMEM_TILE_BUDGET = 12 * 1024 * 1024
_VMEM_LIMIT_BYTES = 32 * 1024 * 1024


# ----------------------------------------------------------------------------- #
# Pallas kernels
# ----------------------------------------------------------------------------- #
def _reduce_conv_kernel(x_ref, w_ref, b_ref, o_ref):
    """1x1 conv (channel reduction) as one channels-first MXU matmul per step.

    x_ref: (Cin, tm)   lane-dense slab of one batch element (tm = tile of T*N)
    w_ref: (Cout, Cin) squeezed Conv2d weight (out,in,1,1)->(out,in), resident
    b_ref: (Cout, 1)   bias, broadcast over the lane dim
    o_ref: (Cout, tm)  lane-dense, unmasked store
    """
    y = jnp.dot(w_ref[...], x_ref[...], preferred_element_type=jnp.float32)
    o_ref[...] = (y + b_ref[...]).astype(o_ref.dtype)


def _pad_channels_kernel(x_ref, o_ref):
    """Zero-pad the channel (sublane) dim: (Cin, tm) -> (Cout, tm). Two stores,
    no concatenated temp in vregs."""
    cin = x_ref.shape[0]
    o_ref[:cin, :] = x_ref[...].astype(o_ref.dtype)
    o_ref[cin:, :] = jnp.zeros((o_ref.shape[0] - cin, o_ref.shape[1]), o_ref.dtype)


# ----------------------------------------------------------------------------- #
# Tiling helpers
# ----------------------------------------------------------------------------- #
def _compiler_params():
    return pltpu.CompilerParams(
        dimension_semantics=("parallel", "parallel"),
        vmem_limit_bytes=_VMEM_LIMIT_BYTES,
    )


def _pick_m_tile(m_padded, cin, cout, itemsize, batch):
    """Largest lane tile (multiple of 128, divisor of m_padded) whose
    double-buffered x+out footprint fits the VMEM budget; then make sure the
    parallel grid exposes >= 2 steps (v7x megacore)."""
    bytes_per_lane = 2 * (cin + cout) * itemsize            # 2x = double buffer
    tm_cap = max(_LANE, (_VMEM_TILE_BUDGET // (bytes_per_lane * _LANE)) * _LANE)
    tm = min(m_padded, tm_cap)
    tm -= tm % _LANE
    tm = max(tm, _LANE)
    while m_padded % tm != 0:
        tm -= _LANE
    if batch * (m_padded // tm) < 2 and m_padded >= 2 * _LANE:
        tm = max(_LANE, (m_padded // 2) - ((m_padded // 2) % _LANE))
        while m_padded % tm != 0:
            tm -= _LANE
    return tm


# ----------------------------------------------------------------------------- #
# ResAlign.forward
# ----------------------------------------------------------------------------- #
def res_align(x, out_dim, reduce_w=None, reduce_b=None):
    """ResAlign.forward.

    x: (batch, in_dim, seq_len-(Kt-1), num_nodes) -> (batch, out_dim, ..., ...)
    reduce_w: (out_dim, in_dim), reduce_b: (out_dim,)  (used only if in_dim > out_dim)
    """
    B, Cin, T, N = x.shape
    if Cin == out_dim:
        return x  # identity branch: no data movement required

    M = T * N
    M_pad = pl.cdiv(M, _LANE) * _LANE
    x3 = x.reshape(B, Cin, M)                 # free reshape, no transpose glue
    if M_pad != M:
        x3 = jnp.pad(x3, ((0, 0), (0, 0), (0, M_pad - M)))
    itemsize = jnp.dtype(x.dtype).itemsize
    tm = _pick_m_tile(M_pad, Cin, out_dim, itemsize, B)
    grid = (B, M_pad // tm)

    if Cin > out_dim:
        if reduce_w is None or reduce_b is None:
            raise ValueError("in_dim > out_dim requires reduce_conv weight and bias")
        cost = pl.CostEstimate(
            flops=2 * B * out_dim * Cin * M_pad,
            transcendentals=0,
            bytes_accessed=(B * Cin * M_pad + B * out_dim * M_pad) * itemsize
                           + (out_dim * Cin + out_dim) * 4,
        )
        out = pl.pallas_call(
            _reduce_conv_kernel,
            out_shape=jax.ShapeDtypeStruct((B, out_dim, M_pad), x.dtype),
            grid=grid,
            in_specs=[
                pl.BlockSpec((pl.Squeezed(), Cin, tm), lambda b, m: (b, 0, m)),
                pl.BlockSpec((out_dim, Cin), lambda b, m: (0, 0)),   # resident W
                pl.BlockSpec((out_dim, 1), lambda b, m: (0, 0)),     # resident bias
            ],
            out_specs=pl.BlockSpec((pl.Squeezed(), out_dim, tm),
                                   lambda b, m: (b, 0, m)),
            compiler_params=_compiler_params(),
            cost_estimate=cost,
        )(x3, reduce_w.astype(x.dtype),
          reduce_b.reshape(out_dim, 1).astype(jnp.float32))
    else:  # Cin < out_dim: zero-pad channels
        cost = pl.CostEstimate(
            flops=0,
            transcendentals=0,
            bytes_accessed=(B * Cin * M_pad + B * out_dim * M_pad) * itemsize,
        )
        out = pl.pallas_call(
            _pad_channels_kernel,
            out_shape=jax.ShapeDtypeStruct((B, out_dim, M_pad), x.dtype),
            grid=grid,
            in_specs=[pl.BlockSpec((pl.Squeezed(), Cin, tm),
                                   lambda b, m: (b, 0, m))],
            out_specs=pl.BlockSpec((pl.Squeezed(), out_dim, tm),
                                   lambda b, m: (b, 0, m)),
            compiler_params=_compiler_params(),
            cost_estimate=cost,
        )(x3)

    if M_pad != M:
        out = out[:, :, :M]
    return out.reshape(B, out_dim, T, N)


# ----------------------------------------------------------------------------- #
# Plain-JAX reference (mirrors the PyTorch module) for validation
# ----------------------------------------------------------------------------- #
def res_align_ref(x, out_dim, reduce_w=None, reduce_b=None):
    B, Cin, T, N = x.shape
    if Cin > out_dim:
        return (jnp.einsum('oc,bctn->botn', reduce_w, x)
                + reduce_b.reshape(1, out_dim, 1, 1))
    elif Cin < out_dim:
        pad = jnp.zeros((B, out_dim - Cin, T, N), x.dtype)
        return jnp.concatenate([x, pad], axis=1)
    return x


# ----------------------------------------------------------------------------- #
if __name__ == "__main__":
    key = jax.random.PRNGKey(0)
    k1, k2, k3, k4, k5, k6 = jax.random.split(key, 6)

    # (batch, channels, seq_len-(Kt-1), num_nodes); T*N = 128 lanes (lane-dense)
    B, T, N = 2, 8, 16

    # --- branch 1: in_dim > out_dim  ->  1x1 reduce conv on the MXU ------------
    Cin_a, Cout_a = 32, 8
    xa = jax.random.normal(k1, (B, Cin_a, T, N), jnp.float32)
    wa = 0.1 * jax.random.normal(k2, (Cout_a, Cin_a), jnp.float32)
    ba = 0.1 * jax.random.normal(k3, (Cout_a,), jnp.float32)
    ya = jax.jit(lambda x, w, b: res_align(x, Cout_a, w, b))(xa, wa, ba)

    # --- branch 2: in_dim < out_dim  ->  channel zero-pad ----------------------
    Cin_b, Cout_b = 4, 8
    xb = jax.random.normal(k4, (B, Cin_b, T, N), jnp.float32)
    yb = jax.jit(lambda x: res_align(x, Cout_b))(xb)

    # --- branch 3: in_dim == out_dim ->  identity -------------------------------
    Cin_c = Cout_c = 8
    xc = jax.random.normal(k5, (B, Cin_c, T, N), jnp.float32)
    yc = jax.jit(lambda x: res_align(x, Cout_c))(xc)

    # --- branch 4: ragged M (T*N % 128 != 0) -> padded-M path ------------------
    Td, Nd, Cin_d, Cout_d = 5, 9, 16, 8
    xd = jax.random.normal(k6, (B, Cin_d, Td, Nd), jnp.float32)
    wd = 0.1 * jax.random.normal(k2, (Cout_d, Cin_d), jnp.float32)
    bd = 0.1 * jax.random.normal(k3, (Cout_d,), jnp.float32)
    yd = jax.jit(lambda x, w, b: res_align(x, Cout_d, w, b))(xd, wd, bd)

    jax.block_until_ready((ya, yb, yc, yd))

    # Validate against the plain-JAX reference of the PyTorch module.
    ya_ref = res_align_ref(xa, Cout_a, wa, ba)
    yb_ref = res_align_ref(xb, Cout_b)
    yc_ref = res_align_ref(xc, Cout_c)
    yd_ref = res_align_ref(xd, Cout_d, wd, bd)

    assert ya.shape == (B, Cout_a, T, N)
    assert yb.shape == (B, Cout_b, T, N)
    assert yc.shape == (B, Cout_c, T, N)
    assert yd.shape == (B, Cout_d, Td, Nd)
    assert bool(jnp.all(jnp.isfinite(ya)))
    assert bool(jnp.allclose(ya, ya_ref, atol=1e-5, rtol=1e-5))
    assert bool(jnp.array_equal(yb, yb_ref))
    assert bool(jnp.array_equal(yc, yc_ref))
    assert bool(jnp.allclose(yd, yd_ref, atol=1e-5, rtol=1e-5))

    print("KERNEL_OK")
</pallas_src>

<mosaic_0001>
module attributes {stable_mosaic.version = 11 : i64} {
  func.func @_reduce_conv_kernel(%arg0: i32, %arg1: i32, %arg2: memref<1x32x128xf32, #tpu.memory_space<vmem>>, %arg3: memref<8x32xf32, #tpu.memory_space<vmem>>, %arg4: memref<8x1xf32, #tpu.memory_space<vmem>>, %arg5: memref<1x8x128xf32, #tpu.memory_space<vmem>>) attributes {dimension_semantics = [#tpu.dimension_semantics<parallel>, #tpu.dimension_semantics<parallel>], iteration_bounds = array<i64: 2, 1>, scalar_prefetch = 0 : i64, scratch_operands = 0 : i64, tpu.core_type = #tpu.core_type<tc>, window_params = [{transform_indices = @transform_0, window_bounds = array<i64: 1, 32, 128>}, {pipeline_mode = #tpu.pipeline_mode<synchronous>, transform_indices = @transform_1, window_bounds = array<i64: 8, 32>}, {pipeline_mode = #tpu.pipeline_mode<synchronous>, transform_indices = @transform_2, window_bounds = array<i64: 8, 1>}, {transform_indices = @transform_3, window_bounds = array<i64: 1, 8, 128>}]} {
    %c0 = arith.constant 0 : index
    %c0_0 = arith.constant 0 : index
    %0 = vector.load %arg3[%c0, %c0_0] : memref<8x32xf32, #tpu.memory_space<vmem>>, vector<8x32xf32>
    %c0_1 = arith.constant 0 : index
    %c0_2 = arith.constant 0 : index
    %c0_3 = arith.constant 0 : index
    %1 = vector.load %arg2[%c0_1, %c0_2, %c0_3] : memref<1x32x128xf32, #tpu.memory_space<vmem>>, vector<1x32x128xf32>
    %2 = vector.shape_cast %1 : vector<1x32x128xf32> to vector<32x128xf32>
    %cst = arith.constant dense<0.000000e+00> : vector<8x128xf32>
    %3 = tpu.matmul %0, %2, %cst {dimension_numbers = #tpu.dot_dimension_numbers<[1], [0], [0], [1], [0, 0, 1, 1], [], []>} : vector<8x32xf32>, vector<32x128xf32>, vector<8x128xf32> -> vector<8x128xf32>
    %c0_4 = arith.constant 0 : index
    %c0_5 = arith.constant 0 : index
    %4 = vector.load %arg4[%c0_4, %c0_5] : memref<8x1xf32, #tpu.memory_space<vmem>>, vector<8x1xf32>
    %5 = vector.broadcast %4 : vector<8x1xf32> to vector<8x128xf32>
    %6 = arith.addf %3, %5 : vector<8x128xf32>
    %c0_6 = arith.constant 0 : index
    %c0_7 = arith.constant 0 : index
    %c0_8 = arith.constant 0 : index
    %7 = vector.load %arg5[%c0_6, %c0_7, %c0_8] : memref<1x8x128xf32, #tpu.memory_space<vmem>>, vector<1x8x128xf32>
    %8 = vector.shape_cast %7 : vector<1x8x128xf32> to vector<8x128xf32>
    %9 = vector.shape_cast %6 : vector<8x128xf32> to vector<1x8x128xf32>
    tpu.vector_store %arg5[%c0_6, %c0_7, %c0_8], %9 {strides = array<i32>} : memref<1x8x128xf32, #tpu.memory_space<vmem>>, vector<1x8x128xf32>,
    return
  }
  func.func @transform_0(%arg0: i32, %arg1: i32) -> (i32, i32, i32) {
    %c0_i32 = arith.constant 0 : i32
    %c0_i32_0 = arith.constant 0 : i32
    return %arg0, %c0_i32, %arg1 : i32, i32, i32
  }
  func.func @transform_1(%arg0: i32, %arg1: i32) -> (i32, i32) {
    %c0_i32 = arith.constant 0 : i32
    %c0_i32_0 = arith.constant 0 : i32
    %c0_i32_1 = arith.constant 0 : i32
    return %c0_i32, %c0_i32_0 : i32, i32
  }
  func.func @transform_2(%arg0: i32, %arg1: i32) -> (i32, i32) {
    %c0_i32 = arith.constant 0 : i32
    %c0_i32_0 = arith.constant 0 : i32
    %c0_i32_1 = arith.constant 0 : i32
    return %c0_i32, %c0_i32_0 : i32, i32
  }
  func.func @transform_3(%arg0: i32, %arg1: i32) -> (i32, i32, i32) {
    %c0_i32 = arith.constant 0 : i32
    %c0_i32_0 = arith.constant 0 : i32
    return %arg0, %c0_i32, %arg1 : i32, i32, i32
  }
}

</mosaic_0001>

<bundles_post_ra>
// kernel: _lambda_.1
= control target key start
LH: loop header
LB: loop body
LE: loop exit
PB: predicated region body
PF: predicated region fallthrough
CT: control target
= control target key end

     0   :  { %s474_s12 = smov 0   ;;  %s476_s13 = smov 0   ;;  %s513_s0 = inlined_call_operand.vmem [shape: f32[2,32,128], index: 0, kind: input, shape index: {}]   ;;  %s514_s1 = inlined_call_operand.vmem [shape: f32[8,32], index: 1, kind: input, shape index: {}]   ;;  %s515_s2 = inlined_call_operand.vmem [shape: f32[8,1], index: 2, kind: input, shape index: {}]   ;;  %s516_s3 = inlined_call_operand.vmem [shape: f32[2,8,128], index: 3, kind: output, shape index: {}]  }
   0x1   :  { %s478_s14 = smov 0  }
   0x2 LB: > { %s25_s15 = sadd.s32 1, %s444_s13  ;;  %p367_p0 = scmp.ge.s32.totalorder %s448_s14, 1  ;;  %s448_s14 = sphi %s478_s14, %s13_s14   ;;  %s444_s13 = sphi %s476_s13, %s518_s13   ;;  %s440_s12 = sphi %s474_s12, %s517_s12  }
   0x3   : > { %p27_p1 = scmp.ge.s32.totalorder %s25_s15, 2  ;;  %p156_p2 = scmp.lt.s32.totalorder %s448_s14, 3 }
   0x5   : > { %s520_s15 = smov (%p27_p1, %s25_s15), 0  ;;  %p157_p3 = pnand %p367_p0, %p156_p2 }
   0x6   : > { %p185_p4 = scmp.lt.s32.totalorder (!%p157_p3), %s440_s12, 1  ;;  %v450_v0 = vmov (!%p157_p3), 0.0|0.0   ;;  %vm451_vm0 = vmmov (!%p157_p3), 0   ;;  %v452_v1 = vmov (!%p157_p3), 0.0   ;;  %v205_v2 = vld [vmem:[%s515_s2] sm:$0xff] (!%p157_p3)  ;;  %v453_v3 = vmov (!%p157_p3), 0  }
   0x7   : > { %160 = sbr.rel (%p157_p3) target bundleno = 242 (0xf2), region = 32  ;;  %391 = vmatprep.subr.bf16.mxu0 (!%p157_p3), %v450_v0  ;;  %388 = vmatprep.mubr.msk.f32.mxu0 (!%p157_p3), %vm451_vm0, %v452_v1  ;;  %v200_v10 = vld [vmem:[%s514_s1] sm:$0xff] (!%p157_p3)  ;;  %vm211_vm1 = vcmask (!%p157_p3), 261120  }
   0x8   : > { %425 = vset.pattern.permute.xlu0 (!%p157_p3), %v453_v3 }
   0x9   : > { %208 = vperm.xlu0 (!%p157_p3), %425, %v205_v2  }
   0xe   : > { %s522_s12 = smov (!%p185_p4, %s440_s12), 1 }
   0xf   : > { %s374_s18 = sshll.u32 %s522_s12, 5  ;;  %s370_s24 = sshll.u32 %s522_s12, 3 }
  0x10   : > { %s192_s21 = scalar_lea.vmem %s513_s0, %s374_s18  ;;  %s199_s27 = scalar_lea.vmem %s516_s3, %s370_s24 }
  0x11   : > { %v201_v4 = vld [vmem:[%s192_s21] sm:$0xff]  ;;  %v202_v5 = vld [vmem:[%s192_s21 + $0x8] sm:$0xff]  ;;  %v203_v6 = vld [vmem:[%s192_s21 + $0x10] sm:$0xff] }
  0x12   : > { %v392_v7 = vpack.c.bf16 %v202_v5, %v201_v4  ;;  %v204_v8 = vld [vmem:[%s192_s21 + $0x18] sm:$0xff] }
  0x13   : > { %v395_v9 = vpack.c.bf16 %v204_v8, %v203_v6 }
  0x14   : > { %393 = vmatpush3.bf16.msra.mxu0 %v392_v7 }
  0x15   : > { %394 = vmatprep.subr.bf16.mxu0 %v450_v0 }
  0x18   : > { %396 = vmatpush3.bf16.msra.mxu0 %v395_v9 }
  0x1b   : > { %389 = vmatmul.mubr.msk.f32.vlgmr.msra.gmra.mrb[0].mxu0 %vm211_vm1, %v200_v10 }
  0x88   : > { %v209_v11 = vpop.permute.xlu0 %208 }
  0xee   : > { %v281_v12 = vpop.f32.mrb[0].mxu0 }
  0xef   : > { %v282_v13 = vadd.f32 %v281_v12, %v209_v11  ;;  %v390_v14 = vpop.f32.mrb[1].mxu0 }
  0xf1   : > { %285 = vst [vmem:[%s199_s27] sm:$0xff] %v282_v13 }
  0xf2 PF: > { %s13_s14 = sadd.s32 1, %s448_s14   ;;  %s517_s12 = smov %s444_s13 }
  0xf3   : > { %p10_p5 = scmp.ge.s32.totalorder %s13_s14, 4   ;;  %s518_s13 = smov %s520_s15 }
  0xf5   :  { %12 = sbr.rel (!%p10_p5) target bundleno = 2 (0x2), region = 62 }

</bundles_post_ra>
